<compile_context>
chip_gen: v7x
topology: tpu7x:2x2x1
jax: 0.10.0
libtpu: 0.0.40
codegen_flags: <defaults>
</compile_context>

<pallas_src>
import functools

import jax
import jax.numpy as jnp
from jax import lax
from jax.experimental import pallas as pl
from jax.experimental.pallas import tpu as pltpu


_CompilerParams = (getattr(pltpu, "CompilerParams", None)
                   or getattr(pltpu, "TPUCompilerParams", None))


def _round_up(x, m):
    return ((x + m - 1) // m) * m


def _cdiv(a, b):
    return (a + b - 1) // b


def _tpu_vmem_and_cores():
    """Best-effort (per-TensorCore VMEM bytes, TensorCores sharing the grid)."""
    kind = ""
    try:
        kind = jax.devices()[0].device_kind.lower()
    except Exception:
        pass
    if "v7" in kind:
        return 64 << 20, 2                     # v7x: 64 MiB / TC, 2 TCs
    if ("v5" in kind) or ("v6" in kind):
        return 128 << 20, 1                    # v5e / v6e: 128 MiB, 1 TC
    try:                                       # unknown chip: ask the runtime
        cap = int(getattr(pltpu.get_tpu_info(), "vmem_capacity_bytes", 0) or 0)
        if cap:
            return cap, (2 if cap <= (64 << 20) else 1)
    except Exception:
        pass
    return 64 << 20, 2                         # conservative fallback


def _block_spec(shape, index_map, *, single_buffered=False):
    """BlockSpec; grid-invariant blocks optionally single-buffered so their
    second DMA buffer's VMEM is freed.  Falls back cleanly on older jax."""
    if single_buffered and hasattr(pl, "Buffered"):
        try:
            return pl.BlockSpec(shape, index_map, pipeline_mode=pl.Buffered(1))
        except TypeError:
            pass
    return pl.BlockSpec(shape, index_map)


def _choose_m_tiling(M, tm_cap, cores):
    """M tile (multiple of 128) and #tiles; even #tiles on 2-TC chips."""
    tm = max(128, min(tm_cap, _round_up(M, 128)))
    gm = _cdiv(M, tm)
    if cores >= 2 and M > 128 and (gm < 2 or gm % 2):
        gm_target = gm + 1 if gm % 2 else 2
        tm = max(128, min(tm, _round_up(_cdiv(M, gm_target), 128)))
        gm = _cdiv(M, tm)
        if gm % 2:
            gm += 1          # pad one extra (zero) tile to balance the 2 TCs
    return tm, gm


def _plan_tiles(M, K_pad, Cout_pad, out_bytes, vmem_cap, cores):
    """Pick (tm, num_m_tiles, tk, vmem_limit_bytes) under the per-TC VMEM cap.

    Accounts for the double-buffered patch tile, double-buffered output tile,
    f32 accumulator scratch, the weight block (single-buffered when whole-K is
    resident, double-buffered when K is tiled) and the shift row, plus
    headroom for Mosaic internal scratch."""
    vmem_limit = int(min(max(vmem_cap - (16 << 20), 32 << 20), 100 << 20))
    budget = vmem_limit - (6 << 20)
    tm_max = 1024 if vmem_cap >= (100 << 20) else 512
    shift_bytes = Cout_pad * 4

    def per_row(tk_):
        # bf16 patches x2 buffers + out x2 buffers + f32 accumulator scratch
        return 2 * tk_ * 2 + 2 * Cout_pad * out_bytes + Cout_pad * 4

    # Path 1: whole K resident, weight single-buffered.
    avail = budget - K_pad * Cout_pad * 2 - shift_bytes
    if avail >= 128 * per_row(K_pad):
        tm_cap = min(tm_max, (avail // per_row(K_pad)) // 128 * 128)
        tm, gm = _choose_m_tiling(M, tm_cap, cores)
        return tm, gm, K_pad, vmem_limit

    # Path 2: tile K (innermost "arbitrary" axis), weight double-buffered.
    tk = min(K_pad, 1024)
    while tk > 128 and (budget - 2 * tk * Cout_pad * 2 - shift_bytes
                        ) < 256 * per_row(tk):
        tk -= 128
    avail = max(budget - 2 * tk * Cout_pad * 2 - shift_bytes,
                128 * per_row(tk))
    tm_cap = max(128, min(tm_max, (avail // per_row(tk)) // 128 * 128))
    tm, gm = _choose_m_tiling(M, tm_cap, cores)
    return tm, gm, tk, vmem_limit


def _basic_conv_kernel(p_ref, w_ref, shift_ref, o_ref, acc_ref, *, relu):
    """Grid = (M tiles, K tiles).  Accumulate the im2col GEMM over K in an f32
    VMEM scratch; on the last K step add the BN shift, apply ReLU, store."""
    k = pl.program_id(1)

    @pl.when(k == 0)
    def _():
        acc_ref[...] = jnp.zeros_like(acc_ref)

    acc_ref[...] += jnp.dot(p_ref[...], w_ref[...],
                            preferred_element_type=jnp.float32)

    @pl.when(k == pl.num_programs(1) - 1)
    def _():
        y = acc_ref[...] + shift_ref[...]          # broadcast (1, Cout_pad)
        if relu:
            y = jnp.maximum(y, 0.0)
        o_ref[...] = y.astype(o_ref.dtype)


def basic_conv_forward(x, weight, gamma=None, beta=None,
                       running_mean=None, running_var=None, *,
                       stride=1, padding=0, dilation=1, eps=1e-5,
                       relu=True, bn=True, bias=None,
                       compute_dtype=jnp.bfloat16, out_dtype=None,
                       tm=None, tk=None):
    """x: NCHW. weight: (Cout, Cin, KH, KW). Returns NCHW in `out_dtype`
    (default: x.dtype). MXU operands are cast to `compute_dtype` (default
    bf16); accumulation + BN/ReLU epilogue run in f32."""
    N, Cin, H, W = x.shape
    Cout, Cin_w, KH, KW = weight.shape
    if Cin_w != Cin:
        raise NotImplementedError("groups != 1 not supported")  # TODO(synk)
    out_dtype = jnp.dtype(x.dtype if out_dtype is None else out_dtype)
    compute_dtype = jnp.dtype(compute_dtype)
    f32 = jnp.float32

    # ---- glue: im2col, feature order (Cin, KH, KW) matches OIHW weight. ----
    # Cast to compute dtype BEFORE the layout transpose (half the copy bytes).
    # TODO(synk): for whole-network use keep activations NHWC and fuse patch
    # extraction into the kernel; the materialized im2col here is ~KH*KW x the
    # activation HBM traffic and dominates wall-clock on small layers.
    patches = lax.conv_general_dilated_patches(
        x, filter_shape=(KH, KW),
        window_strides=(stride, stride),
        padding=((padding, padding), (padding, padding)),
        rhs_dilation=(dilation, dilation),
        dimension_numbers=("NCHW", "OIHW", "NCHW"),
    )                                              # (N, Cin*KH*KW, OH, OW)
    _, Kdim, OH, OW = patches.shape
    patches = patches.astype(compute_dtype)
    patches = jnp.transpose(patches, (0, 2, 3, 1)).reshape(N * OH * OW, Kdim)
    M = N * OH * OW

    # ---- fold BN (inference stats) + optional conv bias into scale/shift ---
    if bn:
        scale = gamma.astype(f32) / jnp.sqrt(running_var.astype(f32) + eps)
        shift = beta.astype(f32) - running_mean.astype(f32) * scale
        if bias is not None:
            shift = shift + bias.astype(f32) * scale
    else:
        scale = jnp.ones((Cout,), f32)
        shift = bias.astype(f32) if bias is not None else jnp.zeros((Cout,), f32)

    # ---- tiling plan (VMEM-aware, chip-aware) ------------------------------
    Cout_pad = _round_up(max(Cout, 128), 128)
    K_pad = _round_up(Kdim, 128)
    vmem_cap, cores = _tpu_vmem_and_cores()
    plan_tm, plan_gm, plan_tk, vmem_limit = _plan_tiles(
        M, K_pad, Cout_pad, out_dtype.itemsize, vmem_cap, cores)
    if tk is None:
        tk = plan_tk
    else:
        tk = min(max(128, _round_up(tk, 128)), K_pad)
    K_pad = _round_up(K_pad, tk)
    k_tiles = K_pad // tk
    if tm is None:
        tm, gm = plan_tm, plan_gm
    else:
        tm = max(128, _round_up(tm, 128))
        gm = _cdiv(M, tm)
    M_pad = gm * tm

    # ---- pad operands: K zero-padded (numerically free for the dot), Cout
    # padded to a lane-dense multiple of 128 (unmasked vst), M padded to the
    # tile grid.  Padded rows flow through shift/ReLU but are cropped below;
    # never reduce over out_flat before the [:M, :Cout] crop. -----------------
    if M_pad != M or K_pad != Kdim:
        patches = jnp.pad(patches, ((0, M_pad - M), (0, K_pad - Kdim)))
    w_mat = weight.reshape(Cout, Cin * KH * KW).astype(f32).T * scale[None, :]
    w_mat = jnp.pad(w_mat, ((0, K_pad - Kdim), (0, Cout_pad - Cout)))
    w_mat = w_mat.astype(compute_dtype)
    shift = jnp.pad(shift, (0, Cout_pad - Cout)).reshape(1, Cout_pad).astype(f32)

    kernel = functools.partial(_basic_conv_kernel, relu=relu)
    out_flat = pl.pallas_call(
        kernel,
        out_shape=jax.ShapeDtypeStruct((M_pad, Cout_pad), out_dtype),
        grid_spec=pltpu.PrefetchScalarGridSpec(
            num_scalar_prefetch=0,
            grid=(gm, k_tiles),                        # reduction axis last
            in_specs=[
                _block_spec((tm, tk), lambda i, k: (i, k)),
                _block_spec((tk, Cout_pad), lambda i, k: (k, 0),
                            single_buffered=(k_tiles == 1)),
                _block_spec((1, Cout_pad), lambda i, k: (0, 0),
                            single_buffered=True),
            ],
            out_specs=pl.BlockSpec((tm, Cout_pad), lambda i, k: (i, 0)),
            scratch_shapes=[pltpu.VMEM((tm, Cout_pad), jnp.float32)],
        ),
        compiler_params=_CompilerParams(
            dimension_semantics=("parallel", "arbitrary"),
            vmem_limit_bytes=int(vmem_limit),
        ),
    )(patches, w_mat, shift)

    out = out_flat[:M, :Cout].reshape(N, OH, OW, Cout)
    return jnp.transpose(out, (0, 3, 1, 2))            # back to NCHW


def _reference(x, weight, gamma, beta, running_mean, running_var,
               *, stride, padding, dilation, eps=1e-5, relu=True):
    y = lax.conv_general_dilated(
        x, weight,
        window_strides=(stride, stride),
        padding=((padding, padding), (padding, padding)),
        rhs_dilation=(dilation, dilation),
        dimension_numbers=("NCHW", "OIHW", "NCHW"),
    )
    scale = (gamma / jnp.sqrt(running_var + eps)).reshape(1, -1, 1, 1)
    shift = (beta - running_mean * gamma / jnp.sqrt(running_var + eps)
             ).reshape(1, -1, 1, 1)
    y = y * scale + shift
    return jnp.maximum(y, 0.0) if relu else y


if __name__ == "__main__":
    key = jax.random.PRNGKey(0)
    key1, key2 = jax.random.split(key)

    def run_case(kk, *, N, Cin, H, W, Cout, KH, KW, stride, padding, dilation,
                 relu=True, out_dtype=None, tm=None, tk=None, tol=5e-2):
        k_w, k_g, k_b, k_m, k_v, k_x = jax.random.split(kk, 6)
        weight = jax.random.normal(k_w, (Cout, Cin, KH, KW), jnp.float32) * 0.1
        gamma = jax.random.normal(k_g, (Cout,), jnp.float32) * 0.1 + 1.0
        beta = jax.random.normal(k_b, (Cout,), jnp.float32) * 0.1
        running_mean = jax.random.normal(k_m, (Cout,), jnp.float32) * 0.1
        running_var = jax.random.uniform(k_v, (Cout,), jnp.float32, 0.5, 1.5)
        x = jax.random.normal(k_x, (N, Cin, H, W), jnp.float32)

        fwd = jax.jit(functools.partial(
            basic_conv_forward, stride=stride, padding=padding,
            dilation=dilation, relu=relu, out_dtype=out_dtype, tm=tm, tk=tk))
        out = jax.block_until_ready(
            fwd(x, weight, gamma, beta, running_mean, running_var))

        ref = _reference(x, weight, gamma, beta, running_mean, running_var,
                         stride=stride, padding=padding, dilation=dilation,
                         relu=relu)
        assert out.shape == ref.shape, (out.shape, ref.shape)
        # bf16 MXU operands (f32 accumulation) -> looser tolerance.
        assert jnp.allclose(out.astype(jnp.float32), ref, atol=tol, rtol=tol), \
            "mismatch vs reference"

    # Case 1: BasicConv(4, 8, kernel_size=3, stride=1, padding=1) — spec shape.
    run_case(key1, N=2, Cin=4, H=16, W=16, Cout=8, KH=3, KW=3,
             stride=1, padding=1, dilation=1)

    # Case 2: stride/dilation > 1, larger Cin, bf16 output, forced small tiles
    # to exercise the K-tiled accumulator path and a non-128-multiple M.
    run_case(key2, N=2, Cin=16, H=17, W=17, Cout=24, KH=3, KW=3,
             stride=2, padding=2, dilation=2, out_dtype=jnp.bfloat16,
             tm=128, tk=128, tol=8e-2)

    print("KERNEL_OK")
</pallas_src>

<mosaic_0001>
module attributes {stable_mosaic.version = 11 : i64} {
  func.func @_basic_conv_kernel(%arg0: i32, %arg1: i32, %arg2: memref<256x128xbf16, #tpu.memory_space<vmem>>, %arg3: memref<128x128xbf16, #tpu.memory_space<vmem>>, %arg4: memref<1x128xf32, #tpu.memory_space<vmem>>, %arg5: memref<256x128xf32, #tpu.memory_space<vmem>>, %arg6: memref<256x128xf32, #tpu.memory_space<vmem>>) attributes {dimension_semantics = [#tpu.dimension_semantics<parallel>, #tpu.dimension_semantics<arbitrary>], iteration_bounds = array<i64: 2, 1>, scalar_prefetch = 0 : i64, scratch_operands = 1 : i64, tpu.core_type = #tpu.core_type<tc>, window_params = [{transform_indices = @transform_0, window_bounds = array<i64: 256, 128>}, {pipeline_mode = #tpu.pipeline_mode<synchronous>, transform_indices = @transform_1, window_bounds = array<i64: 128, 128>}, {pipeline_mode = #tpu.pipeline_mode<synchronous>, transform_indices = @transform_2, window_bounds = array<i64: 1, 128>}, {transform_indices = @transform_3, window_bounds = array<i64: 256, 128>}]} {
    %c0_i32 = arith.constant 0 : i32
    %0 = arith.cmpi eq, %arg1, %c0_i32 : i32
    %1 = arith.extui %0 : i1 to i32
    %c0_i32_0 = arith.constant 0 : i32
    %2 = arith.cmpi ne, %1, %c0_i32_0 : i32
    scf.if %2 {
      %cst_10 = arith.constant 0.000000e+00 : f32
      %12 = vector.broadcast %cst_10 : f32 to vector<256x128xf32>
      %c0_11 = arith.constant 0 : index
      %c0_12 = arith.constant 0 : index
      %13 = vector.load %arg6[%c0_11, %c0_12] : memref<256x128xf32, #tpu.memory_space<vmem>>, vector<256x128xf32>
      tpu.vector_store %arg6[%c0_11, %c0_12], %12 {strides = array<i32>} : memref<256x128xf32, #tpu.memory_space<vmem>>, vector<256x128xf32>,
    } else {
    }
    %c0 = arith.constant 0 : index
    %c0_1 = arith.constant 0 : index
    %3 = vector.load %arg6[%c0, %c0_1] : memref<256x128xf32, #tpu.memory_space<vmem>>, vector<256x128xf32>
    %c0_2 = arith.constant 0 : index
    %c0_3 = arith.constant 0 : index
    %4 = vector.load %arg2[%c0_2, %c0_3] : memref<256x128xbf16, #tpu.memory_space<vmem>>, vector<256x128xbf16>
    %c0_4 = arith.constant 0 : index
    %c0_5 = arith.constant 0 : index
    %5 = vector.load %arg3[%c0_4, %c0_5] : memref<128x128xbf16, #tpu.memory_space<vmem>>, vector<128x128xbf16>
    %cst = arith.constant dense<0.000000e+00> : vector<256x128xf32>
    %6 = tpu.matmul %4, %5, %cst {dimension_numbers = #tpu.dot_dimension_numbers<[1], [0], [0], [1], [0, 0, 1, 1], [], []>} : vector<256x128xbf16>, vector<128x128xbf16>, vector<256x128xf32> -> vector<256x128xf32>
    %7 = arith.addf %3, %6 : vector<256x128xf32>
    %c0_6 = arith.constant 0 : index
    %c0_7 = arith.constant 0 : index
    %8 = vector.load %arg6[%c0_6, %c0_7] : memref<256x128xf32, #tpu.memory_space<vmem>>, vector<256x128xf32>
    tpu.vector_store %arg6[%c0_6, %c0_7], %7 {strides = array<i32>} : memref<256x128xf32, #tpu.memory_space<vmem>>, vector<256x128xf32>,
    %c0_i32_8 = arith.constant 0 : i32
    %9 = arith.cmpi eq, %arg1, %c0_i32_8 : i32
    %10 = arith.extui %9 : i1 to i32
    %c0_i32_9 = arith.constant 0 : i32
    %11 = arith.cmpi ne, %10, %c0_i32_9 : i32
    scf.if %11 {
      %c0_10 = arith.constant 0 : index
      %c0_11 = arith.constant 0 : index
      %12 = vector.load %arg6[%c0_10, %c0_11] : memref<256x128xf32, #tpu.memory_space<vmem>>, vector<256x128xf32>
      %c0_12 = arith.constant 0 : index
      %c0_13 = arith.constant 0 : index
      %13 = vector.load %arg4[%c0_12, %c0_13] : memref<1x128xf32, #tpu.memory_space<vmem>>, vector<1x128xf32>
      %14 = vector.broadcast %13 : vector<1x128xf32> to vector<256x128xf32>
      %15 = arith.addf %12, %14 : vector<256x128xf32>
      %cst_14 = arith.constant 0.000000e+00 : f32
      %16 = vector.broadcast %cst_14 : f32 to vector<256x128xf32>
      %17 = arith.maximumf %15, %16 : vector<256x128xf32>
      %c0_15 = arith.constant 0 : index
      %c0_16 = arith.constant 0 : index
      %18 = vector.load %arg5[%c0_15, %c0_16] : memref<256x128xf32, #tpu.memory_space<vmem>>, vector<256x128xf32>
      tpu.vector_store %arg5[%c0_15, %c0_16], %17 {strides = array<i32>} : memref<256x128xf32, #tpu.memory_space<vmem>>, vector<256x128xf32>,
    } else {
    }
    return
  }
  func.func @transform_0(%arg0: i32, %arg1: i32) -> (i32, i32) {
    %c0_i32 = arith.constant 0 : i32
    return %arg0, %arg1 : i32, i32
  }
  func.func @transform_1(%arg0: i32, %arg1: i32) -> (i32, i32) {
    %c0_i32 = arith.constant 0 : i32
    %c0_i32_0 = arith.constant 0 : i32
    return %arg1, %c0_i32 : i32, i32
  }
  func.func @transform_2(%arg0: i32, %arg1: i32) -> (i32, i32) {
    %c0_i32 = arith.constant 0 : i32
    %c0_i32_0 = arith.constant 0 : i32
    %c0_i32_1 = arith.constant 0 : i32
    return %c0_i32, %c0_i32_0 : i32, i32
  }
  func.func @transform_3(%arg0: i32, %arg1: i32) -> (i32, i32) {
    %c0_i32 = arith.constant 0 : i32
    %c0_i32_0 = arith.constant 0 : i32
    return %arg0, %c0_i32 : i32, i32
  }
}

</mosaic_0001>

<bundles_post_ra>
// kernel: basic_conv_forward.1
= control target key start
LH: loop header
LB: loop body
LE: loop exit
PB: predicated region body
PF: predicated region fallthrough
CT: control target
= control target key end

     0   :  { %s1143_s12 = smov 0   ;;  %s1145_s13 = smov 0   ;;  %s1293_s0 = inlined_call_operand.vmem [shape: bf16[512,128], index: 0, kind: input, shape index: {}]   ;;  %s1294_s1 = inlined_call_operand.vmem [shape: bf16[128,128], index: 1, kind: input, shape index: {}]   ;;  %s1295_s2 = inlined_call_operand.vmem [shape: f32[1,128], index: 2, kind: input, shape index: {}]   ;;  %s1296_s3 = inlined_call_operand.vmem [shape: f32[512,128], index: 3, kind: output, shape index: {}]  }
   0x1   :  { %s1147_s14 = smov 0  }
   0x2 LB: > { %s25_s15 = sadd.s32 1, %s1117_s13  ;;  %p931_p0 = scmp.ge.s32.totalorder %s1121_s14, 1  ;;  %s1121_s14 = sphi %s1147_s14, %s13_s14   ;;  %s1117_s13 = sphi %s1145_s13, %s1298_s13   ;;  %s1113_s12 = sphi %s1143_s12, %s1297_s12  }
   0x3   : > { %p27_p1 = scmp.ge.s32.totalorder %s25_s15, 2  ;;  %p166_p2 = scmp.lt.s32.totalorder %s1121_s14, 3 }
   0x5   : > { %s1300_s15 = smov (%p27_p1, %s25_s15), 0  ;;  %p167_p3 = pnand %p931_p0, %p166_p2 }
   0x6   : > { %v1075_v0 = vld [vmem:[%s1294_s1] sm:$0xff] (!%p167_p3)   ;;  %s932_s18 = sshll.u32 (!%p167_p3), %s1113_s12, 5  ;;  %v1076_v1 = vld [vmem:[%s1294_s1 + $0x8] sm:$0xff] (!%p167_p3)   ;;  %v1077_v2 = vld [vmem:[%s1294_s1 + $0x10] sm:$0xff] (!%p167_p3)  }
   0x7   : > { %170 = sbr.rel (%p167_p3) target bundleno = 283 (0x11b), region = 32  ;;  %p199_p4 = scmp.lt.s32.totalorder (!%p167_p3), %s932_s18, 63  ;;  %987 = vmatprep.subr.bf16.mxu0 (!%p167_p3), %v1075_v0  ;;  %1035 = vmatprep.subr.bf16.mxu1 (!%p167_p3), %v1075_v0  ;;  %v1078_v3 = vld [vmem:[%s1294_s1 + $0x18] sm:$0xff] (!%p167_p3)   ;;  %v1079_v6 = vld [vmem:[%s1294_s1 + $0x20] sm:$0xff] (!%p167_p3)   ;;  %v1080_v7 = vld [vmem:[%s1294_s1 + $0x28] sm:$0xff] (!%p167_p3)  }
   0x8   : > { %988 = vmatpush3.bf16.msra.mxu0 (!%p167_p3), %v1075_v0  ;;  %1043 = vmatpush3.bf16.msra.mxu1 (!%p167_p3), %v1075_v0  ;;  %v1081_v8 = vld [vmem:[%s1294_s1 + $0x30] sm:$0xff] (!%p167_p3)   ;;  %v1082_v9 = vld [vmem:[%s1294_s1 + $0x38] sm:$0xff] (!%p167_p3)   ;;  %v1212_v24 = vld [vmem:[%s1295_s2] ss:$0 sm:$0xff] (!%p167_p3) }
   0x9   : > { %989 = vmatprep.subr.bf16.mxu0 (!%p167_p3), %v1076_v1  ;;  %1036 = vmatprep.subr.bf16.mxu1 (!%p167_p3), %v1076_v1 }
   0xc   : > { %990 = vmatpush3.bf16.msra.mxu0 (!%p167_p3), %v1076_v1  ;;  %1044 = vmatpush3.bf16.msra.mxu1 (!%p167_p3), %v1076_v1 }
   0xd   : > { %991 = vmatprep.subr.bf16.mxu0 (!%p167_p3), %v1077_v2  ;;  %1037 = vmatprep.subr.bf16.mxu1 (!%p167_p3), %v1077_v2 }
   0xe   : > { %s1302_s18 = smov (!%p199_p4, %s932_s18), 63 }
   0xf   : > { %s933_s23 = sshll.u32 %s1302_s18, 2  ;;  %s935_s12 = sshll.u32 %s1302_s18, 3 }
  0x10   : > { %s1176_s26 = scalar_lea.vmem %s1293_s0, %s933_s23  ;;  %992 = vmatpush3.bf16.msra.mxu0 %v1077_v2  ;;  %1045 = vmatpush3.bf16.msra.mxu1 %v1077_v2  ;;  %s1220_s19 = scalar_lea.vmem %s1296_s3, %s935_s12 }
  0x11   : > { %v1083_v4 = vld [vmem:[%s1176_s26] sm:$0xff]   ;;  %993 = vmatprep.subr.bf16.mxu0 %v1078_v3  ;;  %1038 = vmatprep.subr.bf16.mxu1 %v1078_v3  ;;  %v1085_v10 = vld [vmem:[%s1176_s26 + $0x8] sm:$0xff]   ;;  %v1087_v12 = vld [vmem:[%s1176_s26 + $0x10] sm:$0xff]  }
  0x12   : > { %v1084_v5 = vld [vmem:[%s1176_s26 + $0x40] sm:$0xff]   ;;  %1003 = vmatprep.mubr.bf16.mxu0 %v1083_v4  ;;  %v1086_v11 = vld [vmem:[%s1176_s26 + $0x48] sm:$0xff]   ;;  %v1088_v13 = vld [vmem:[%s1176_s26 + $0x50] sm:$0xff]  }
  0x13   : > { %1019 = vmatprep.mubr.bf16.mxu1 %v1084_v5  ;;  %v1089_v14 = vld [vmem:[%s1176_s26 + $0x18] sm:$0xff]   ;;  %v1091_v16 = vld [vmem:[%s1176_s26 + $0x20] sm:$0xff]   ;;  %v1093_v18 = vld [vmem:[%s1176_s26 + $0x28] sm:$0xff]  }
  0x14   : > { %994 = vmatpush3.bf16.msra.mxu0 %v1078_v3  ;;  %1046 = vmatpush3.bf16.msra.mxu1 %v1078_v3  ;;  %v1090_v15 = vld [vmem:[%s1176_s26 + $0x58] sm:$0xff]   ;;  %v1092_v17 = vld [vmem:[%s1176_s26 + $0x60] sm:$0xff]   ;;  %v1094_v19 = vld [vmem:[%s1176_s26 + $0x68] sm:$0xff]  }
  0x15   : > { %995 = vmatprep.subr.bf16.mxu0 %v1079_v6  ;;  %1039 = vmatprep.subr.bf16.mxu1 %v1079_v6  ;;  %v1095_v20 = vld [vmem:[%s1176_s26 + $0x30] sm:$0xff]   ;;  %v1097_v22 = vld [vmem:[%s1176_s26 + $0x38] sm:$0xff]  }
  0x16   : > { %v1096_v21 = vld [vmem:[%s1176_s26 + $0x70] sm:$0xff]   ;;  %v1098_v23 = vld [vmem:[%s1176_s26 + $0x78] sm:$0xff]  }
  0x18   : > { %996 = vmatpush3.bf16.msra.mxu0 %v1079_v6  ;;  %1047 = vmatpush3.bf16.msra.mxu1 %v1079_v6 }
  0x19   : > { %997 = vmatprep.subr.bf16.mxu0 %v1080_v7  ;;  %1040 = vmatprep.subr.bf16.mxu1 %v1080_v7 }
  0x1c   : > { %998 = vmatpush3.bf16.msra.mxu0 %v1080_v7  ;;  %1048 = vmatpush3.bf16.msra.mxu1 %v1080_v7 }
  0x1d   : > { %999 = vmatprep.subr.bf16.mxu0 %v1081_v8  ;;  %1041 = vmatprep.subr.bf16.mxu1 %v1081_v8 }
  0x20   : > { %1000 = vmatpush3.bf16.msra.mxu0 %v1081_v8  ;;  %1049 = vmatpush3.bf16.msra.mxu1 %v1081_v8 }
  0x21   : > { %1001 = vmatprep.subr.bf16.mxu0 %v1082_v9  ;;  %1042 = vmatprep.subr.bf16.mxu1 %v1082_v9 }
  0x24   : > { %1002 = vmatpush3.bf16.msra.mxu0 %v1082_v9  ;;  %1050 = vmatpush3.bf16.msra.mxu1 %v1082_v9 }
  0x27   : > { %1004 = vmatmul.mubr.bf16.vlgmr.msra.gmra.mrb[0].mxu0 %v1085_v10  ;;  %1020 = vmatmul.mubr.bf16.vlgmr.msra.gmra.mrb[0].mxu1 %v1086_v11 }
  0x28   : > { %1007 = vmatprep.mubr.bf16.mxu0 %v1087_v12  ;;  %1023 = vmatprep.mubr.bf16.mxu1 %v1088_v13 }
  0x2f   : > { %1008 = vmatmul.mubr.bf16.gmra.mrb[4].mxu0 %v1089_v14  ;;  %1024 = vmatmul.mubr.bf16.gmra.mrb[4].mxu1 %v1090_v15 }
  0x30   : > { %1011 = vmatprep.mubr.bf16.mxu0 %v1091_v16  ;;  %1027 = vmatprep.mubr.bf16.mxu1 %v1092_v17 }
  0x37   : > { %1012 = vmatmul.mubr.bf16.gmra.mrb[8].mxu0 %v1093_v18  ;;  %1028 = vmatmul.mubr.bf16.gmra.mrb[8].mxu1 %v1094_v19 }
  0x38   : > { %1015 = vmatprep.mubr.bf16.mxu0 %v1095_v20  ;;  %1031 = vmatprep.mubr.bf16.mxu1 %v1096_v21 }
  0x3f   : > { %1016 = vmatmul.mubr.bf16.gmra.mrb[12].mxu0 %v1097_v22  ;;  %1032 = vmatmul.mubr.bf16.gmra.mrb[12].mxu1 %v1098_v23 }
  0xfa   : > { %v1005_v25 = vpop.f32.mrb[0].mxu0  ;;  %v1021_v26 = vpop.f32.mrb[0].mxu1 }
  0xfb   : > { %v749_v27 = vadd.f32 %v1005_v25, %v1212_v24  ;;  %v765_v28 = vadd.f32 %v1021_v26, %v1212_v24  ;;  %v514_v29 = vpop.f32.mrb[1].mxu0  ;;  %v578_v30 = vpop.f32.mrb[1].mxu1 }
  0xfc   : > { %v747_v31 = vadd.f32 %v1212_v24, %v514_v29  ;;  %v763_v32 = vadd.f32 %v1212_v24, %v578_v30  ;;  %v1006_v33 = vpop.f32.mrb[2].mxu0  ;;  %v1022_v34 = vpop.f32.mrb[2].mxu1 }
  0xfd   : > { %v781_v35 = vmax.f32 %v749_v27, 0.0  ;;  %v797_v36 = vmax.f32 %v765_v28, 0.0  ;;  %v750_v37 = vadd.f32 %v1006_v33, %v1212_v24  ;;  %v766_v38 = vadd.f32 %v1022_v34, %v1212_v24  ;;  %v517_v39 = vpop.f32.mrb[3].mxu0  ;;  %v581_v40 = vpop.f32.mrb[3].mxu1 }
  0xfe   : > { %v779_v41 = vmax.f32 %v747_v31, 0.0  ;;  %v795_v42 = vmax.f32 %v763_v32, 0.0  ;;  %v748_v43 = vadd.f32 %v1212_v24, %v517_v39  ;;  %v764_v44 = vadd.f32 %v1212_v24, %v581_v40 }
  0xff   : > { %813 = vst [vmem:[%s1220_s19 + $0x10] sm:$0xff] %v781_v35  ;;  %829 = vst [vmem:[%s1220_s19 + $0x90] sm:$0xff] %v797_v36  ;;  %v782_v45 = vmax.f32 %v750_v37, 0.0  ;;  %v798_v46 = vmax.f32 %v766_v38, 0.0 }
 0x100   : > { %811 = vst [vmem:[%s1220_s19] sm:$0xff] %v779_v41  ;;  %827 = vst [vmem:[%s1220_s19 + $0x80] sm:$0xff] %v795_v42  ;;  %v780_v47 = vmax.f32 %v748_v43, 0.0  ;;  %v796_v48 = vmax.f32 %v764_v44, 0.0 }
 0x101   : > { %814 = vst [vmem:[%s1220_s19 + $0x18] sm:$0xff] %v782_v45  ;;  %830 = vst [vmem:[%s1220_s19 + $0x98] sm:$0xff] %v798_v46 }
 0x102   : > { %812 = vst [vmem:[%s1220_s19 + $0x8] sm:$0xff] %v780_v47  ;;  %828 = vst [vmem:[%s1220_s19 + $0x88] sm:$0xff] %v796_v48  ;;  %v1009_v49 = vpop.f32.mrb[4].mxu0  ;;  %v1025_v50 = vpop.f32.mrb[4].mxu1 }
 0x103   : > { %v753_v51 = vadd.f32 %v1009_v49, %v1212_v24  ;;  %v769_v52 = vadd.f32 %v1025_v50, %v1212_v24  ;;  %v530_v53 = vpop.f32.mrb[5].mxu0  ;;  %v594_v54 = vpop.f32.mrb[5].mxu1 }
 0x104   : > { %v751_v55 = vadd.f32 %v1212_v24, %v530_v53  ;;  %v767_v56 = vadd.f32 %v1212_v24, %v594_v54  ;;  %v1010_v57 = vpop.f32.mrb[6].mxu0  ;;  %v1026_v58 = vpop.f32.mrb[6].mxu1 }
 0x105   : > { %v785_v59 = vmax.f32 %v753_v51, 0.0  ;;  %v801_v60 = vmax.f32 %v769_v52, 0.0  ;;  %v754_v61 = vadd.f32 %v1010_v57, %v1212_v24  ;;  %v770_v62 = vadd.f32 %v1026_v58, %v1212_v24  ;;  %v533_v63 = vpop.f32.mrb[7].mxu0  ;;  %v597_v0 = vpop.f32.mrb[7].mxu1 }
 0x106   : > { %v783_v1 = vmax.f32 %v751_v55, 0.0  ;;  %v799_v2 = vmax.f32 %v767_v56, 0.0  ;;  %v752_v3 = vadd.f32 %v1212_v24, %v533_v63  ;;  %v768_v4 = vadd.f32 %v1212_v24, %v597_v0 }
 0x107   : > { %817 = vst [vmem:[%s1220_s19 + $0x30] sm:$0xff] %v785_v59  ;;  %833 = vst [vmem:[%s1220_s19 + $0xb0] sm:$0xff] %v801_v60  ;;  %v786_v5 = vmax.f32 %v754_v61, 0.0  ;;  %v802_v6 = vmax.f32 %v770_v62, 0.0 }
 0x108   : > { %815 = vst [vmem:[%s1220_s19 + $0x20] sm:$0xff] %v783_v1  ;;  %831 = vst [vmem:[%s1220_s19 + $0xa0] sm:$0xff] %v799_v2  ;;  %v784_v7 = vmax.f32 %v752_v3, 0.0  ;;  %v800_v8 = vmax.f32 %v768_v4, 0.0 }
 0x109   : > { %818 = vst [vmem:[%s1220_s19 + $0x38] sm:$0xff] %v786_v5  ;;  %834 = vst [vmem:[%s1220_s19 + $0xb8] sm:$0xff] %v802_v6 }
 0x10a   : > { %816 = vst [vmem:[%s1220_s19 + $0x28] sm:$0xff] %v784_v7  ;;  %832 = vst [vmem:[%s1220_s19 + $0xa8] sm:$0xff] %v800_v8  ;;  %v1013_v9 = vpop.f32.mrb[8].mxu0  ;;  %v1029_v10 = vpop.f32.mrb[8].mxu1 }
 0x10b   : > { %v757_v11 = vadd.f32 %v1013_v9, %v1212_v24  ;;  %v773_v12 = vadd.f32 %v1029_v10, %v1212_v24  ;;  %v546_v13 = vpop.f32.mrb[9].mxu0  ;;  %v610_v14 = vpop.f32.mrb[9].mxu1 }
 0x10c   : > { %v755_v15 = vadd.f32 %v1212_v24, %v546_v13  ;;  %v771_v16 = vadd.f32 %v1212_v24, %v610_v14  ;;  %v1014_v17 = vpop.f32.mrb[10].mxu0  ;;  %v1030_v18 = vpop.f32.mrb[10].mxu1 }
 0x10d   : > { %v789_v19 = vmax.f32 %v757_v11, 0.0  ;;  %v805_v20 = vmax.f32 %v773_v12, 0.0  ;;  %v758_v21 = vadd.f32 %v1014_v17, %v1212_v24  ;;  %v774_v22 = vadd.f32 %v1030_v18, %v1212_v24  ;;  %v549_v23 = vpop.f32.mrb[11].mxu0  ;;  %v613_v25 = vpop.f32.mrb[11].mxu1 }
 0x10e   : > { %v787_v26 = vmax.f32 %v755_v15, 0.0  ;;  %v803_v27 = vmax.f32 %v771_v16, 0.0  ;;  %v756_v28 = vadd.f32 %v1212_v24, %v549_v23  ;;  %v772_v29 = vadd.f32 %v1212_v24, %v613_v25 }
 0x10f   : > { %821 = vst [vmem:[%s1220_s19 + $0x50] sm:$0xff] %v789_v19  ;;  %837 = vst [vmem:[%s1220_s19 + $0xd0] sm:$0xff] %v805_v20  ;;  %v790_v30 = vmax.f32 %v758_v21, 0.0  ;;  %v806_v31 = vmax.f32 %v774_v22, 0.0 }
 0x110   : > { %819 = vst [vmem:[%s1220_s19 + $0x40] sm:$0xff] %v787_v26  ;;  %835 = vst [vmem:[%s1220_s19 + $0xc0] sm:$0xff] %v803_v27  ;;  %v788_v32 = vmax.f32 %v756_v28, 0.0  ;;  %v804_v33 = vmax.f32 %v772_v29, 0.0 }
 0x111   : > { %822 = vst [vmem:[%s1220_s19 + $0x58] sm:$0xff] %v790_v30  ;;  %838 = vst [vmem:[%s1220_s19 + $0xd8] sm:$0xff] %v806_v31 }
 0x112   : > { %820 = vst [vmem:[%s1220_s19 + $0x48] sm:$0xff] %v788_v32  ;;  %836 = vst [vmem:[%s1220_s19 + $0xc8] sm:$0xff] %v804_v33  ;;  %v1017_v34 = vpop.f32.mrb[12].mxu0  ;;  %v1033_v35 = vpop.f32.mrb[12].mxu1 }
 0x113   : > { %v761_v36 = vadd.f32 %v1017_v34, %v1212_v24  ;;  %v777_v37 = vadd.f32 %v1033_v35, %v1212_v24  ;;  %v562_v38 = vpop.f32.mrb[13].mxu0  ;;  %v626_v39 = vpop.f32.mrb[13].mxu1 }
 0x114   : > { %v759_v40 = vadd.f32 %v1212_v24, %v562_v38  ;;  %v775_v41 = vadd.f32 %v1212_v24, %v626_v39  ;;  %v1018_v42 = vpop.f32.mrb[14].mxu0  ;;  %v1034_v43 = vpop.f32.mrb[14].mxu1 }
 0x115   : > { %v793_v44 = vmax.f32 %v761_v36, 0.0  ;;  %v809_v45 = vmax.f32 %v777_v37, 0.0  ;;  %v762_v46 = vadd.f32 %v1018_v42, %v1212_v24  ;;  %v778_v47 = vadd.f32 %v1034_v43, %v1212_v24  ;;  %v565_v48 = vpop.f32.mrb[15].mxu0  ;;  %v629_v49 = vpop.f32.mrb[15].mxu1 }
 0x116   : > { %v791_v50 = vmax.f32 %v759_v40, 0.0  ;;  %v807_v51 = vmax.f32 %v775_v41, 0.0  ;;  %v760_v52 = vadd.f32 %v1212_v24, %v565_v48  ;;  %v776_v53 = vadd.f32 %v1212_v24, %v629_v49 }
 0x117   : > { %825 = vst [vmem:[%s1220_s19 + $0x70] sm:$0xff] %v793_v44  ;;  %841 = vst [vmem:[%s1220_s19 + $0xf0] sm:$0xff] %v809_v45  ;;  %v794_v54 = vmax.f32 %v762_v46, 0.0  ;;  %v810_v55 = vmax.f32 %v778_v47, 0.0 }
 0x118   : > { %823 = vst [vmem:[%s1220_s19 + $0x60] sm:$0xff] %v791_v50  ;;  %839 = vst [vmem:[%s1220_s19 + $0xe0] sm:$0xff] %v807_v51  ;;  %v792_v56 = vmax.f32 %v760_v52, 0.0  ;;  %v808_v57 = vmax.f32 %v776_v53, 0.0 }
 0x119   : > { %826 = vst [vmem:[%s1220_s19 + $0x78] sm:$0xff] %v794_v54  ;;  %842 = vst [vmem:[%s1220_s19 + $0xf8] sm:$0xff] %v810_v55 }
 0x11a   : > { %824 = vst [vmem:[%s1220_s19 + $0x68] sm:$0xff] %v792_v56  ;;  %840 = vst [vmem:[%s1220_s19 + $0xe8] sm:$0xff] %v808_v57 }
 0x11b PF: > { %s13_s14 = sadd.s32 1, %s1121_s14   ;;  %s1297_s12 = smov %s1117_s13 }
 0x11c   : > { %p10_p5 = scmp.ge.s32.totalorder %s13_s14, 4   ;;  %s1298_s13 = smov %s1300_s15 }
 0x11e   :  { %12 = sbr.rel (!%p10_p5) target bundleno = 2 (0x2), region = 73 }

</bundles_post_ra>
